<compile_context>
chip_gen: v6e
topology: v6e:2x2x1
jax: 0.10.0
libtpu: 0.0.40
codegen_flags: <defaults>
</compile_context>

<pallas_src>
import numpy as np
import jax
import jax.numpy as jnp
from jax import lax
from jax.experimental import pallas as pl
from jax.experimental.pallas import tpu as pltpu


def _round_up(x, m):
    return ((x + m - 1) // m) * m


def _pick_tb(B):
    """Batch rows packed per grid step: as close to the MXU row height (128)
    as possible (multiple of 8), while keeping >= 2 grid blocks when the
    batch allows it (v7x megacore split)."""
    if B <= 8:
        return 8
    tb = _round_up(-(-B // 2), 8)       # ceil(B/2), rounded up to sublanes
    return min(128, tb)


def end2end_dp_pallas(D, len_a, len_b, gamma=1.0, lbd_ord=1.0, lbd_dur=5.0,
                      lbd_len=0.2, mxu_bf16=False):
    B, l1, l2 = D.shape
    L1P = l1 + 2
    L2P = _round_up(l2 + 2, 128)        # lane-pad to a multiple of 128

    gamma_f = float(gamma)
    inv_gamma = 1.0 / gamma_f
    lbd_ord_f = float(lbd_ord)
    lbd_dur_f = float(lbd_dur)
    lbd_len_f = float(lbd_len)

    TB = _pick_tb(B)
    nblk = -(-B // TB)
    Bp = nblk * TB

    D = D.astype(jnp.float32)
    # Clamp lengths so every output block is well defined and the dynamic
    # i-loop / D-row DMA never goes out of bounds.
    len_a = jnp.clip(len_a.astype(jnp.int32), 1, l1)
    len_b = jnp.clip(len_b.astype(jnp.int32), 1, l2)

    # Bucket the batch by len_a (descending) so per-block max(len_a) — the
    # dynamic i-loop bound — is tight for every block (padding rows, len=1,
    # fall into the last/shortest block).
    perm = jnp.argsort(-len_a)
    D_s = D[perm]
    len_a_s = len_a[perm]
    len_b_s = len_b[perm]

    if Bp != B:
        D_s = jnp.pad(D_s, ((0, Bp - B), (0, 0), (0, 0)))
        len_a_s = jnp.pad(len_a_s, (0, Bp - B), constant_values=1)
        len_b_s = jnp.pad(len_b_s, (0, Bp - B), constant_values=1)

    # ---- padded DP grid with length_dist baked in (fuses with the padding
    #      pass; removes a transcendental per serial DP iteration) ----------
    ii = jnp.arange(L1P, dtype=jnp.float32)[None, :, None]          # i
    jj = jnp.arange(L2P, dtype=jnp.float32)[None, None, :]          # j
    g = 1.0 - jnp.exp(-((ii - jj) ** 2) / (2.0 * (jj + 1.0)))       # (1,L1P,L2P)
    Mf = len_a_s.astype(jnp.float32)[:, None, None]
    Nf = len_b_s.astype(jnp.float32)[:, None, None]
    ld = g * (lbd_dur_f / Mf) + (jnp.abs(Mf - Nf) / Mf) * lbd_len_f

    Dfull = jnp.zeros((Bp, L1P, L2P), jnp.float32)
    Dfull = Dfull.at[:, 1:l1 + 1, 1:l2 + 1].set(D_s)
    Dfull = Dfull + ld                                              # D + length_dist

    # Contiguous-per-block row layout for manual row streaming:
    # Drows[k*L1P + i] == DP row i of block k -> one chunky (TB, L2P) DMA.
    Drows = (Dfull.reshape(nblk, TB, L1P, L2P)
                  .transpose(0, 2, 1, 3)
                  .reshape(nblk * L1P, TB, L2P))

    # Grid-invariant softmin matrix E[p, j] = exp(-order_penalty(j, p)/gamma),
    # computed once on the host, DMA'd once (constant index_map).
    pj = jnp.arange(L2P, dtype=jnp.float32)
    op = lbd_ord_f * jnp.maximum(1.0 - (pj[None, :] - pj[:, None]), 0.0)
    mxu_dtype = jnp.bfloat16 if mxu_bf16 else jnp.float32
    E = jnp.exp(-op * inv_gamma).astype(mxu_dtype)

    lenA2 = len_a_s.reshape(Bp, 1)
    lenB2 = len_b_s.reshape(Bp, 1)
    maxM_blk = jnp.max(len_a_s.reshape(nblk, TB), axis=1).astype(jnp.int32)

    def kernel(maxM_ref, lenA_ref, lenB_ref, e_ref, d_hbm, out_ref,
               wbuf, dbuf, dsem):
        k = pl.program_id(0)
        maxM = maxM_ref[k]
        base = k * L1P                                  # first D-row of block

        Mv = lenA_ref[...]                              # (TB, 1) int32
        Nv = lenB_ref[...]                              # (TB, 1) int32
        ws = jnp.maximum(5, jnp.abs(Mv - Nv) + 1)       # (TB, 1)

        col = lax.broadcasted_iota(jnp.int32, (1, L2P), 1)

        # Prime the double buffer with DP row 1 of this block.
        pltpu.make_async_copy(d_hbm.at[base + 1], dbuf.at[1], dsem.at[1]).start()

        # DP row 0: [0, inf, inf, ...] for every packed batch row.
        wbuf[...] = jnp.broadcast_to(jnp.where(col == 0, 0.0, jnp.inf),
                                     (TB, L2P)).astype(jnp.float32)

        @pl.loop(1, maxM + 1)
        def _(i):
            slot = i & 1
            # Wait for DP row i of this block (same transfer size as start).
            pltpu.make_async_copy(d_hbm.at[0], dbuf.at[slot],
                                  dsem.at[slot]).wait()

            # Prefetch row i+1 into the other slot (hides behind the softmin).
            @pl.when(i + 1 <= maxM)
            def _prefetch():
                pltpu.make_async_copy(d_hbm.at[base + i + 1],
                                      dbuf.at[1 - slot],
                                      dsem.at[1 - slot]).start()

            curr_lb = jnp.maximum(1, i - ws)            # (TB, 1)
            curr_rb = jnp.minimum(Nv + 2, i + ws)
            prev_lb = jnp.maximum(0, curr_lb - 1)
            prev_rb = jnp.minimum(Nv + 2, curr_rb - 1)

            w_prev = wbuf[...]                          # (TB, L2P)

            # softmin over the previous row via one MXU matmul per DP row.
            pmask = (col >= prev_lb) & (col < prev_rb)
            neg_w = -w_prev * inv_gamma
            masked = jnp.where(pmask, neg_w, -jnp.inf)
            m = jnp.max(masked, axis=1, keepdims=True)  # (TB, 1)
            v = jnp.where(pmask, jnp.exp(neg_w - m), 0.0)
            rsum = jnp.dot(v.astype(mxu_dtype), e_ref[...],
                           preferred_element_type=jnp.float32)
            # Guard the shared-max LSE against all-contributions underflow
            # (would give log(0) = -inf and poison the rest of the DP).
            rsum = jnp.maximum(rsum, jnp.float32(1e-30))
            softmin = -gamma_f * (jnp.log(rsum) + m)    # (TB, L2P)

            d_row = dbuf[slot]                          # D + length_dist, row i

            new_row = d_row + softmin
            band = (col >= curr_lb) & (col < curr_rb)
            new_row = jnp.where(band, new_row, jnp.inf)
            # Rows that already finished (i > M) keep their row-M values.
            wbuf[...] = jnp.where(i <= Mv, new_row, w_prev)

        w_final = wbuf[...]                             # holds row M_k per row
        score = jnp.sum(jnp.where(col == Nv, w_final, 0.0),
                        axis=1, keepdims=True)          # (TB, 1)
        out_ref[...] = jnp.broadcast_to(score, (TB, 128))

    # Explicit scoped-VMEM budget (default 16/32 MiB is below what moderate
    # l2 needs for E); capped at 64 MiB so it is also valid on v7x.
    e_itemsize = 2 if mxu_bf16 else 4
    vmem_est = (2 * L2P * L2P * e_itemsize        # E block (buffer pair)
                + 3 * TB * L2P * 4                # D row double buffer + w row
                + 8 * TB * L2P * 4                # loop temporaries headroom
                + 4 * TB * 128 * 4
                + (1 << 20))
    vmem_limit = int(min(64 * 2 ** 20, max(32 * 2 ** 20, 2 * vmem_est)))

    out = pl.pallas_call(
        kernel,
        out_shape=jax.ShapeDtypeStruct((Bp, 128), jnp.float32),
        grid_spec=pltpu.PrefetchScalarGridSpec(
            num_scalar_prefetch=1,
            grid=(nblk,),
            in_specs=[
                pl.BlockSpec((TB, 1), lambda k, mm: (k, 0)),        # len_a
                pl.BlockSpec((TB, 1), lambda k, mm: (k, 0)),        # len_b
                pl.BlockSpec((L2P, L2P), lambda k, mm: (0, 0)),     # E (const)
                pl.BlockSpec(memory_space=pl.ANY),                  # D rows (HBM)
            ],
            out_specs=pl.BlockSpec((TB, 128), lambda k, mm: (k, 0)),
            scratch_shapes=[
                pltpu.VMEM((TB, L2P), jnp.float32),                 # DP row state
                pltpu.VMEM((2, TB, L2P), jnp.float32),              # D row dbl-buf
                pltpu.SemaphoreType.DMA((2,)),
            ],
        ),
        compiler_params=pltpu.CompilerParams(
            dimension_semantics=("parallel",),
            vmem_limit_bytes=vmem_limit),
    )(maxM_blk, lenA2, lenB2, E, Drows)

    out_sorted = out[:B, 0]
    # Undo the length-sort permutation: sorted position t -> original perm[t].
    return jnp.zeros((B,), jnp.float32).at[perm].set(out_sorted)


def end2end_dp_ref(D, len_a, len_b, gamma=1.0, lbd_ord=1.0, lbd_dur=5.0,
                   lbd_len=0.2):
    """Pure-numpy port of compute_end2end_dp + the forward score extraction."""
    D = np.asarray(D, np.float64)
    B, l1, l2 = D.shape
    sigma = 1.0
    margin = 1.0
    window = np.full((B, l1 + 2, l2 + 2), np.inf)
    length_dist = np.zeros((B, l1 + 2, l2 + 2))
    order_penalty = np.zeros((B, l2 + 2, l2 + 2))
    Dp = np.zeros((B, l1 + 2, l2 + 2))
    Dp[:, 1:l1 + 1, 1:l2 + 1] = D
    for k in range(B):
        M = int(len_a[k]); N = int(len_b[k])
        for i in range(M + 2):
            for j in range(N + 2):
                err = abs(i - j)
                length_dist[k, i, j] = 1 - np.exp(-err ** 2 / (2 * sigma ** 2 * (j + 1)))
        length_dist[k] = length_dist[k] / float(M) * lbd_dur + abs(M - N) / float(M) * lbd_len
    for k in range(B):
        N = int(len_b[k])
        for i in range(N + 2):
            for j in range(N + 2):
                order_penalty[k, i, j] = lbd_ord * max(margin - (i - j), 0)
    window[:, 0, 0] = 0
    for k in range(B):
        M = int(len_a[k]); N = int(len_b[k])
        ws = max(5, abs(M - N) + 1)
        for i in range(1, M + 2):
            curr_lb = max(1, i - ws)
            curr_rb = min(N + 2, i + ws)
            prev_lb = max(0, curr_lb - 1)
            prev_rb = min(N + 2, curr_rb - 1)
            for j_curr in range(curr_lb, curr_rb):
                r0 = -(window[k, i - 1, prev_lb:prev_rb]
                       + order_penalty[k, j_curr, prev_lb:prev_rb]) / gamma
                rmax = np.max(r0)
                rsum = np.sum(np.exp(r0 - rmax))
                softmin = -gamma * (np.log(rsum) + rmax)
                window[k, i, j_curr] = Dp[k, i, j_curr] + length_dist[k, i, j_curr] + softmin
    return np.array([window[k, int(len_a[k]), int(len_b[k])] for k in range(B)])


if __name__ == "__main__":
    key = jax.random.PRNGKey(0)
    B, l1, l2 = 3, 12, 10
    D = jax.random.normal(key, (B, l1, l2), dtype=jnp.float32)
    len_a = jnp.array([10, 12, 9], dtype=jnp.int32)
    len_b = jnp.array([8, 10, 9], dtype=jnp.int32)

    out = end2end_dp_pallas(D, len_a, len_b, gamma=1.0, lbd_ord=1.0,
                            lbd_dur=5.0, lbd_len=0.2)
    out = jax.block_until_ready(out)

    ref = end2end_dp_ref(np.asarray(D), np.asarray(len_a), np.asarray(len_b),
                         gamma=1.0, lbd_ord=1.0, lbd_dur=5.0, lbd_len=0.2)
    np.testing.assert_allclose(np.asarray(out), ref, rtol=1e-3, atol=1e-2)
    print("KERNEL_OK")
</pallas_src>

<mosaic_0001>
module attributes {stable_mosaic.version = 11 : i64} {
  func.func @kernel(%arg0: i32, %arg1: memref<1xi32, #tpu.memory_space<smem>>, %arg2: memref<8x1xi32, #tpu.memory_space<vmem>>, %arg3: memref<8x1xi32, #tpu.memory_space<vmem>>, %arg4: memref<128x128xf32, #tpu.memory_space<vmem>>, %arg5: memref<14x8x128xf32, #tpu.memory_space<any>>, %arg6: memref<8x128xf32, #tpu.memory_space<vmem>>, %arg7: memref<8x128xf32, #tpu.memory_space<vmem>>, %arg8: memref<2x8x128xf32, #tpu.memory_space<vmem>>, %arg9: memref<2x!tpu.dma_semaphore, #tpu.memory_space<semaphore_mem>>) attributes {dimension_semantics = [#tpu.dimension_semantics<parallel>], iteration_bounds = array<i64: 1>, scalar_prefetch = 1 : i64, scratch_operands = 3 : i64, tpu.core_type = #tpu.core_type<tc>, window_params = [{transform_indices = @transform_0, window_bounds = array<i64: 8, 1>}, {transform_indices = @transform_1, window_bounds = array<i64: 8, 1>}, {pipeline_mode = #tpu.pipeline_mode<synchronous>, transform_indices = @transform_2, window_bounds = array<i64: 128, 128>}, {}, {transform_indices = @transform_4, window_bounds = array<i64: 8, 128>}]} {
    %0 = arith.index_cast %arg0 : i32 to index
    %1 = memref.load %arg1[%0] : memref<1xi32, #tpu.memory_space<smem>>
    %c14_i32 = arith.constant 14 : i32
    %2 = arith.muli %arg0, %c14_i32 : i32
    %c0 = arith.constant 0 : index
    %c0_0 = arith.constant 0 : index
    %3 = vector.load %arg2[%c0, %c0_0] : memref<8x1xi32, #tpu.memory_space<vmem>>, vector<8x1xi32>
    %c0_1 = arith.constant 0 : index
    %c0_2 = arith.constant 0 : index
    %4 = vector.load %arg3[%c0_1, %c0_2] : memref<8x1xi32, #tpu.memory_space<vmem>>, vector<8x1xi32>
    %5 = arith.subi %3, %4 : vector<8x1xi32>
    %6 = math.absi %5 : vector<8x1xi32>
    %c1_i32 = arith.constant 1 : i32
    %7 = vector.broadcast %c1_i32 : i32 to vector<8x1xi32>
    %8 = arith.addi %6, %7 : vector<8x1xi32>
    %c5_i32 = arith.constant 5 : i32
    %9 = vector.broadcast %c5_i32 : i32 to vector<8x1xi32>
    %10 = arith.maxsi %9, %8 : vector<8x1xi32>
    %11 = tpu.iota {dimensions = array<i32: 1>} : vector<1x128xi32>
    %c1_i32_3 = arith.constant 1 : i32
    %12 = arith.addi %2, %c1_i32_3 : i32
    %c1_i32_4 = arith.constant 1 : i32
    %c1_i32_5 = arith.constant 1 : i32
    %c0_i32 = arith.constant 0 : i32
    %c0_i32_6 = arith.constant 0 : i32
    %13 = tpu.memref_slice %arg5[%12, %c0_i32, %c0_i32_6] : memref<14x8x128xf32, #tpu.memory_space<any>> -> memref<1x8x128xf32, #tpu.memory_space<any>>
    %14 = tpu.memref_squeeze %13 : memref<1x8x128xf32, #tpu.memory_space<any>> -> memref<8x128xf32, #tpu.memory_space<any>>
    %c0_i32_7 = arith.constant 0 : i32
    %c0_i32_8 = arith.constant 0 : i32
    %15 = tpu.memref_slice %arg8[%c1_i32_4, %c0_i32_7, %c0_i32_8] : memref<2x8x128xf32, #tpu.memory_space<vmem>> -> memref<1x8x128xf32, #tpu.memory_space<vmem>>
    %16 = tpu.memref_squeeze %15 : memref<1x8x128xf32, #tpu.memory_space<vmem>> -> memref<8x128xf32, #tpu.memory_space<vmem>>
    %17 = tpu.memref_slice %arg9[%c1_i32_5] : memref<2x!tpu.dma_semaphore, #tpu.memory_space<semaphore_mem>> -> memref<1x!tpu.dma_semaphore, #tpu.memory_space<semaphore_mem>>
    %18 = tpu.memref_squeeze %17 : memref<1x!tpu.dma_semaphore, #tpu.memory_space<semaphore_mem>> -> memref<!tpu.dma_semaphore, #tpu.memory_space<semaphore_mem>>
    tpu.enqueue_dma source(%14 : memref<8x128xf32, #tpu.memory_space<any>>) target(%16 : memref<8x128xf32, #tpu.memory_space<vmem>>) target_semaphore(%18 : memref<!tpu.dma_semaphore, #tpu.memory_space<semaphore_mem>>)
    %c0_i32_9 = arith.constant 0 : i32
    %19 = vector.broadcast %c0_i32_9 : i32 to vector<1x128xi32>
    %20 = arith.cmpi eq, %11, %19 : vector<1x128xi32>
    %cst = arith.constant 0.000000e+00 : f32
    %cst_10 = arith.constant 0x7F800000 : f32
    %21 = vector.broadcast %cst : f32 to vector<1x128xf32>
    %22 = vector.broadcast %cst_10 : f32 to vector<1x128xf32>
    %23 = arith.select %20, %21, %22 : vector<1x128xi1>, vector<1x128xf32>
    %24 = vector.shape_cast %23 : vector<1x128xf32> to vector<1x128xf32>
    %25 = vector.broadcast %24 : vector<1x128xf32> to vector<8x128xf32>
    %c0_11 = arith.constant 0 : index
    %c0_12 = arith.constant 0 : index
    %26 = vector.load %arg7[%c0_11, %c0_12] : memref<8x128xf32, #tpu.memory_space<vmem>>, vector<8x128xf32>
    tpu.vector_store %arg7[%c0_11, %c0_12], %25 {strides = array<i32>} : memref<8x128xf32, #tpu.memory_space<vmem>>, vector<8x128xf32>,
    %c1_i32_13 = arith.constant 1 : i32
    %27 = arith.addi %1, %c1_i32_13 : i32
    %c1_i32_14 = arith.constant 1 : i32
    %28 = arith.subi %27, %c1_i32_14 : i32
    %c1_i32_15 = arith.constant 1 : i32
    %c1_i32_16 = arith.constant 1 : i32
    %29 = arith.subi %c1_i32_15, %c1_i32_16 : i32
    %30 = arith.addi %28, %29 : i32
    %c1_i32_17 = arith.constant 1 : i32
    %31 = arith.divsi %30, %c1_i32_17 : i32
    %c1_i32_18 = arith.constant 1 : i32
    %c1_i32_19 = arith.constant 1 : i32
    %c0_i32_20 = arith.constant 0 : i32
    %32 = arith.subi %31, %c0_i32_20 : i32
    %33 = arith.addi %c0_i32_20, %32 : i32
    %c1_i32_21 = arith.constant 1 : i32
    scf.for %arg10 = %c0_i32_20 to %33 step %c1_i32_21  : i32 {
      %45 = arith.muli %arg10, %c1_i32_18 : i32
      %46 = arith.addi %c1_i32_19, %45 : i32
      %c1_i32_28 = arith.constant 1 : i32
      %47 = arith.andi %46, %c1_i32_28 : i32
      %c0_i32_29 = arith.constant 0 : i32
      %c0_i32_30 = arith.constant 0 : i32
      %c0_i32_31 = arith.constant 0 : i32
      %48 = tpu.memref_slice %arg5[%c0_i32_29, %c0_i32_30, %c0_i32_31] : memref<14x8x128xf32, #tpu.memory_space<any>> -> memref<1x8x128xf32, #tpu.memory_space<any>>
      %49 = tpu.memref_squeeze %48 : memref<1x8x128xf32, #tpu.memory_space<any>> -> memref<8x128xf32, #tpu.memory_space<any>>
      %c0_i32_32 = arith.constant 0 : i32
      %c0_i32_33 = arith.constant 0 : i32
      %50 = tpu.memref_slice %arg8[%47, %c0_i32_32, %c0_i32_33] : memref<2x8x128xf32, #tpu.memory_space<vmem>> -> memref<1x8x128xf32, #tpu.memory_space<vmem>>
      %51 = tpu.memref_squeeze %50 : memref<1x8x128xf32, #tpu.memory_space<vmem>> -> memref<8x128xf32, #tpu.memory_space<vmem>>
      %52 = tpu.memref_slice %arg9[%47] : memref<2x!tpu.dma_semaphore, #tpu.memory_space<semaphore_mem>> -> memref<1x!tpu.dma_semaphore, #tpu.memory_space<semaphore_mem>>
      %53 = tpu.memref_squeeze %52 : memref<1x!tpu.dma_semaphore, #tpu.memory_space<semaphore_mem>> -> memref<!tpu.dma_semaphore, #tpu.memory_space<semaphore_mem>>
      tpu.wait_dma2 semaphore(%53 : memref<!tpu.dma_semaphore, #tpu.memory_space<semaphore_mem>>) src(%49 : memref<8x128xf32, #tpu.memory_space<any>>) dst(%51 : memref<8x128xf32, #tpu.memory_space<vmem>>)
      %c1_i32_34 = arith.constant 1 : i32
      %54 = arith.addi %46, %c1_i32_34 : i32
      %55 = arith.cmpi sle, %54, %1 : i32
      %56 = arith.extui %55 : i1 to i32
      %c0_i32_35 = arith.constant 0 : i32
      %57 = arith.cmpi ne, %56, %c0_i32_35 : i32
      scf.if %57 {
        %125 = arith.addi %2, %46 : i32
        %c1_i32_58 = arith.constant 1 : i32
        %126 = arith.addi %125, %c1_i32_58 : i32
        %c1_i32_59 = arith.constant 1 : i32
        %127 = arith.subi %c1_i32_59, %47 : i32
        %c1_i32_60 = arith.constant 1 : i32
        %128 = arith.subi %c1_i32_60, %47 : i32
        %c0_i32_61 = arith.constant 0 : i32
        %c0_i32_62 = arith.constant 0 : i32
        %129 = tpu.memref_slice %arg5[%126, %c0_i32_61, %c0_i32_62] : memref<14x8x128xf32, #tpu.memory_space<any>> -> memref<1x8x128xf32, #tpu.memory_space<any>>
        %130 = tpu.memref_squeeze %129 : memref<1x8x128xf32, #tpu.memory_space<any>> -> memref<8x128xf32, #tpu.memory_space<any>>
        %c0_i32_63 = arith.constant 0 : i32
        %c0_i32_64 = arith.constant 0 : i32
        %131 = tpu.memref_slice %arg8[%127, %c0_i32_63, %c0_i32_64] : memref<2x8x128xf32, #tpu.memory_space<vmem>> -> memref<1x8x128xf32, #tpu.memory_space<vmem>>
        %132 = tpu.memref_squeeze %131 : memref<1x8x128xf32, #tpu.memory_space<vmem>> -> memref<8x128xf32, #tpu.memory_space<vmem>>
        %133 = tpu.memref_slice %arg9[%128] : memref<2x!tpu.dma_semaphore, #tpu.memory_space<semaphore_mem>> -> memref<1x!tpu.dma_semaphore, #tpu.memory_space<semaphore_mem>>
        %134 = tpu.memref_squeeze %133 : memref<1x!tpu.dma_semaphore, #tpu.memory_space<semaphore_mem>> -> memref<!tpu.dma_semaphore, #tpu.memory_space<semaphore_mem>>
        tpu.enqueue_dma source(%130 : memref<8x128xf32, #tpu.memory_space<any>>) target(%132 : memref<8x128xf32, #tpu.memory_space<vmem>>) target_semaphore(%134 : memref<!tpu.dma_semaphore, #tpu.memory_space<semaphore_mem>>)
      } else {
      }
      %58 = vector.broadcast %46 : i32 to vector<8x1xi32>
      %59 = arith.subi %58, %10 : vector<8x1xi32>
      %c1_i32_36 = arith.constant 1 : i32
      %60 = vector.broadcast %c1_i32_36 : i32 to vector<8x1xi32>
      %61 = arith.maxsi %60, %59 : vector<8x1xi32>
      %c2_i32 = arith.constant 2 : i32
      %62 = vector.broadcast %c2_i32 : i32 to vector<8x1xi32>
      %63 = arith.addi %4, %62 : vector<8x1xi32>
      %64 = vector.broadcast %46 : i32 to vector<8x1xi32>
      %65 = arith.addi %64, %10 : vector<8x1xi32>
      %66 = arith.minsi %63, %65 : vector<8x1xi32>
      %c1_i32_37 = arith.constant 1 : i32
      %67 = vector.broadcast %c1_i32_37 : i32 to vector<8x1xi32>
      %68 = arith.subi %61, %67 : vector<8x1xi32>
      %c0_i32_38 = arith.constant 0 : i32
      %69 = vector.broadcast %c0_i32_38 : i32 to vector<8x1xi32>
      %70 = arith.maxsi %69, %68 : vector<8x1xi32>
      %c2_i32_39 = arith.constant 2 : i32
      %71 = vector.broadcast %c2_i32_39 : i32 to vector<8x1xi32>
      %72 = arith.addi %4, %71 : vector<8x1xi32>
      %c1_i32_40 = arith.constant 1 : i32
      %73 = vector.broadcast %c1_i32_40 : i32 to vector<8x1xi32>
      %74 = arith.subi %66, %73 : vector<8x1xi32>
      %75 = arith.minsi %72, %74 : vector<8x1xi32>
      %c0_41 = arith.constant 0 : index
      %c0_42 = arith.constant 0 : index
      %76 = vector.load %arg7[%c0_41, %c0_42] : memref<8x128xf32, #tpu.memory_space<vmem>>, vector<8x128xf32>
      %77 = vector.broadcast %11 : vector<1x128xi32> to vector<8x128xi32>
      %78 = vector.broadcast %70 : vector<8x1xi32> to vector<8x128xi32>
      %79 = arith.cmpi sge, %77, %78 : vector<8x128xi32>
      %80 = vector.broadcast %11 : vector<1x128xi32> to vector<8x128xi32>
      %81 = vector.broadcast %75 : vector<8x1xi32> to vector<8x128xi32>
      %82 = arith.cmpi slt, %80, %81 : vector<8x128xi32>
      %83 = arith.andi %79, %82 : vector<8x128xi1>
      %cst_43 = arith.constant 0.000000e+00 : f32
      %84 = vector.broadcast %cst_43 : f32 to vector<8x128xf32>
      %85 = arith.subf %84, %76 : vector<8x128xf32>
      %cst_44 = arith.constant 1.000000e+00 : f32
      %86 = vector.broadcast %cst_44 : f32 to vector<8x128xf32>
      %87 = arith.mulf %85, %86 : vector<8x128xf32>
      %cst_45 = arith.constant 0xFF800000 : f32
      %88 = vector.broadcast %cst_45 : f32 to vector<8x128xf32>
      %89 = arith.select %83, %87, %88 : vector<8x128xi1>, vector<8x128xf32>
      %cst_46 = arith.constant dense<0xFF800000> : vector<8xf32>
      %90 = vector.multi_reduction <maximumf>, %89, %cst_46 [1] : vector<8x128xf32> to vector<8xf32>
      %91 = vector.shape_cast %90 : vector<8xf32> to vector<8x1xf32>
      %92 = vector.broadcast %91 : vector<8x1xf32> to vector<8x128xf32>
      %93 = arith.subf %87, %92 : vector<8x128xf32>
      %94 = math.exp %93 : vector<8x128xf32>
      %cst_47 = arith.constant 0.000000e+00 : f32
      %95 = vector.broadcast %cst_47 : f32 to vector<8x128xf32>
      %96 = arith.select %83, %94, %95 : vector<8x128xi1>, vector<8x128xf32>
      %c0_48 = arith.constant 0 : index
      %c0_49 = arith.constant 0 : index
      %97 = vector.load %arg4[%c0_48, %c0_49] : memref<128x128xf32, #tpu.memory_space<vmem>>, vector<128x128xf32>
      %cst_50 = arith.constant dense<0.000000e+00> : vector<8x128xf32>
      %98 = tpu.matmul %96, %97, %cst_50 {dimension_numbers = #tpu.dot_dimension_numbers<[1], [0], [0], [1], [0, 0, 1, 1], [], []>} : vector<8x128xf32>, vector<128x128xf32>, vector<8x128xf32> -> vector<8x128xf32>
      %cst_51 = arith.constant 1.000000e-30 : f32
      %99 = vector.broadcast %cst_51 : f32 to vector<8x128xf32>
      %100 = arith.maximumf %98, %99 : vector<8x128xf32>
      %101 = math.log %100 : vector<8x128xf32>
      %102 = vector.broadcast %91 : vector<8x1xf32> to vector<8x128xf32>
      %103 = arith.addf %101, %102 : vector<8x128xf32>
      %cst_52 = arith.constant -1.000000e+00 : f32
      %104 = vector.broadcast %cst_52 : f32 to vector<8x128xf32>
      %105 = arith.mulf %104, %103 : vector<8x128xf32>
      %106 = arith.index_cast %47 : i32 to index
      %c0_53 = arith.constant 0 : index
      %c0_54 = arith.constant 0 : index
      %107 = vector.load %arg8[%106, %c0_53, %c0_54] : memref<2x8x128xf32, #tpu.memory_space<vmem>>, vector<1x8x128xf32>
      %108 = vector.shape_cast %107 : vector<1x8x128xf32> to vector<8x128xf32>
      %109 = arith.addf %108, %105 : vector<8x128xf32>
      %110 = vector.broadcast %11 : vector<1x128xi32> to vector<8x128xi32>
      %111 = vector.broadcast %61 : vector<8x1xi32> to vector<8x128xi32>
      %112 = arith.cmpi sge, %110, %111 : vector<8x128xi32>
      %113 = vector.broadcast %11 : vector<1x128xi32> to vector<8x128xi32>
      %114 = vector.broadcast %66 : vector<8x1xi32> to vector<8x128xi32>
      %115 = arith.cmpi slt, %113, %114 : vector<8x128xi32>
      %116 = arith.andi %112, %115 : vector<8x128xi1>
      %cst_55 = arith.constant 0x7F800000 : f32
      %117 = vector.broadcast %cst_55 : f32 to vector<8x128xf32>
      %118 = arith.select %116, %109, %117 : vector<8x128xi1>, vector<8x128xf32>
      %119 = vector.broadcast %46 : i32 to vector<8x1xi32>
      %120 = arith.cmpi sle, %119, %3 : vector<8x1xi32>
      %121 = vector.shape_cast %120 : vector<8x1xi1> to vector<8x1xi1>
      %122 = vector.broadcast %121 : vector<8x1xi1> to vector<8x128xi1>
      %123 = arith.select %122, %118, %76 : vector<8x128xi1>, vector<8x128xf32>
      %c0_56 = arith.constant 0 : index
      %c0_57 = arith.constant 0 : index
      %124 = vector.load %arg7[%c0_56, %c0_57] : memref<8x128xf32, #tpu.memory_space<vmem>>, vector<8x128xf32>
      tpu.vector_store %arg7[%c0_56, %c0_57], %123 {strides = array<i32>} : memref<8x128xf32, #tpu.memory_space<vmem>>, vector<8x128xf32>,
    }
    %c0_22 = arith.constant 0 : index
    %c0_23 = arith.constant 0 : index
    %34 = vector.load %arg7[%c0_22, %c0_23] : memref<8x128xf32, #tpu.memory_space<vmem>>, vector<8x128xf32>
    %35 = vector.broadcast %11 : vector<1x128xi32> to vector<8x128xi32>
    %36 = vector.broadcast %4 : vector<8x1xi32> to vector<8x128xi32>
    %37 = arith.cmpi eq, %35, %36 : vector<8x128xi32>
    %cst_24 = arith.constant 0.000000e+00 : f32
    %38 = vector.broadcast %cst_24 : f32 to vector<8x128xf32>
    %39 = arith.select %37, %34, %38 : vector<8x128xi1>, vector<8x128xf32>
    %cst_25 = arith.constant dense<0.000000e+00> : vector<8xf32>
    %40 = vector.multi_reduction <add>, %39, %cst_25 [1] : vector<8x128xf32> to vector<8xf32>
    %41 = vector.shape_cast %40 : vector<8xf32> to vector<8x1xf32>
    %42 = vector.shape_cast %41 : vector<8x1xf32> to vector<8x1xf32>
    %43 = vector.broadcast %42 : vector<8x1xf32> to vector<8x128xf32>
    %c0_26 = arith.constant 0 : index
    %c0_27 = arith.constant 0 : index
    %44 = vector.load %arg6[%c0_26, %c0_27] : memref<8x128xf32, #tpu.memory_space<vmem>>, vector<8x128xf32>
    tpu.vector_store %arg6[%c0_26, %c0_27], %43 {strides = array<i32>} : memref<8x128xf32, #tpu.memory_space<vmem>>, vector<8x128xf32>,
    return
  }
  func.func @transform_0(%arg0: i32, %arg1: memref<1xi32, #tpu.memory_space<smem>>) -> (i32, i32) {
    %c0_i32 = arith.constant 0 : i32
    %c0_i32_0 = arith.constant 0 : i32
    return %arg0, %c0_i32 : i32, i32
  }
  func.func @transform_1(%arg0: i32, %arg1: memref<1xi32, #tpu.memory_space<smem>>) -> (i32, i32) {
    %c0_i32 = arith.constant 0 : i32
    %c0_i32_0 = arith.constant 0 : i32
    return %arg0, %c0_i32 : i32, i32
  }
  func.func @transform_2(%arg0: i32, %arg1: memref<1xi32, #tpu.memory_space<smem>>) -> (i32, i32) {
    %c0_i32 = arith.constant 0 : i32
    %c0_i32_0 = arith.constant 0 : i32
    %c0_i32_1 = arith.constant 0 : i32
    return %c0_i32, %c0_i32_0 : i32, i32
  }
  func.func @transform_4(%arg0: i32, %arg1: memref<1xi32, #tpu.memory_space<smem>>) -> (i32, i32) {
    %c0_i32 = arith.constant 0 : i32
    %c0_i32_0 = arith.constant 0 : i32
    return %arg0, %c0_i32 : i32, i32
  }
}

</mosaic_0001>

<bundles_post_ra>
// kernel: tpu_custom_call.1
= control target key start
LH: loop header
LB: loop body
LE: loop exit
PB: predicated region body
PF: predicated region fallthrough
CT: control target
= control target key end

     0   :  { %11 = vsyncpa [#allocation8], 0  ;;  %s644_s0 = inlined_call_operand.<no memory space> [shape: s32[1], index: 0, kind: input, shape index: {}]   ;;  %s645_s1 = inlined_call_operand.vmem [shape: s32[8,1], index: 1, kind: input, shape index: {}]   ;;  %s646_s2 = inlined_call_operand.vmem [shape: s32[8,1], index: 2, kind: input, shape index: {}]   ;;  %s647_s3 = inlined_call_operand.hbm [shape: f32[128,128], index: 3, kind: input, shape index: {}]   ;;  %s648_s4 = inlined_call_operand.hbm [shape: f32[14,8,128], index: 4, kind: input, shape index: {}]   ;;  %s649_s5 = inlined_call_operand.hbm [shape: f32[8,128], index: 5, kind: output, shape index: {}]  }
   0x1   :  { %12 = vsyncpa [#allocation9], 0  ;;  %s494_s18 = smov [#allocation7]  }
   0x2   :  { %s22_s19 = sshll.u32 %s494_s18, 4  ;;  %s23_s19 = int_to_ptr.vmem [resolvable:$true] %s22_s19 }
   0x3   :  { %s398_s20 = scalar_lea.vmem %s23_s19, 2048  ;;  %p403_p1 = scmp.lt.s32.totalorder %s23_s19, %s23_s19 }
   0x4   :  { %p399_p0 = scmp.ne.s32.totalorder %s23_s19, %s398_s20  ;;  %p404_p2 = scmp.lt.s32.totalorder %s398_s20, %s398_s20 }
   0x6   :  { %p405_p3 = por %p404_p2, %p403_p1 }
   0x8   :  { %p406_p4 = pnand %p405_p3, %p399_p0 }
   0xa   :  { %409 = shalt.err (!%p406_p4)
}
   0xb   :  { %s495_s21 = smov 128   ;;  %s496_s22 = smov 8  }
   0xc   :  { %28 = dma.hbm_to_vmem [thread:$0]  %s647_s3, 2048, %s23_s19, [#allocation8], %s495_s21, %s495_s21, %s496_s22  }
   0xd   :  { %484 = dma.done.wait [#allocation8], 2048  }
   0xe   :  { %485 = vsyncadd [#allocation8], 4294965248  ;;  %s284_s27 = scalar_lea.hbm %s648_s4, 128  ;;  %v43_v0 = vlaneseq  ;;  %s497_s28 = smov [#allocation3 + $0x8]  }
   0xf   :  { %s58_s29 = sshll.u32 %s497_s28, 4  ;;  %s498_s6 = smov [#allocation3]   ;;  %s59_s29 = int_to_ptr.vmem [resolvable:$true] %s58_s29 }
  0x10   :  { %v541_v1 = vand.u32 127, %v43_v0  ;;  %s420_s30 = scalar_lea.vmem %s59_s29, 128  ;;  %s422_s7 = sshll.u32 %s498_s6, 4  ;;  %s543_s7 = int_to_ptr.vmem [resolvable:$false] %s422_s7 }
  0x11   :  { %p421_p5 = scmp.ne.s32.totalorder %s59_s29, %s420_s30  ;;  %s424_s3 = scalar_lea.vmem %s543_s7, 256 }
  0x12   :  { %p425_p6 = scmp.lt.s32.totalorder %s59_s29, %s543_s7  ;;  %p426_p7 = scmp.lt.s32.totalorder %s424_s3, %s420_s30 }
  0x14   :  { %p427_p8 = por %p426_p7, %p425_p6 }
  0x16   :  { %p428_p9 = pnand %p427_p8, %p421_p5 }
  0x18   :  { %431 = shalt.err (!%p428_p9)  }
  0x19   :  { %61 = dma.hbm_to_vmem [thread:$0]  %s284_s27, 128, %s59_s29, [#allocation4 + $0x1]  ;;  %vm62_vm0 = vcmp.eq.s32.totalorder %v541_v1, 0  ;;  %v499_v2 = vmov inf   ;;  %v553_v4 = vld [vmem:[%s645_s1] sm:$0xff] }
  0x1a   :  { %v63_v3 = vsel %vm62_vm0, 0.0, %v499_v2  ;;  %v558_v5 = vld [vmem:[%s646_s2] sm:$0xff]  ;;  %p300_p10 = scmp.le.s32.totalorder %s644_s0, 0 }
  0x1b   :  { %64 = vst [vmem:[#allocation2] sm:$0xff] %v63_v3  ;;  %v36_v6 = vsub.s32 %v553_v4, %v558_v5  ;;  %s567_s1 = smov (!%p300_p10), 0  }
  0x1d   :  { %v38_v7 = vsub.s32 0, %v36_v6 }
  0x1f   :  { %v299_v8 = vmin.u32 %v38_v7, %v36_v6 }
  0x20   :  { %296 = sbr.rel (%p300_p10) target bundleno = 557 (0x22d), region = 58 }
  0x21   :  { %v40_v9 = vadd.s32 1, %v299_v8 }
  0x23   :  { %vm41_vm1 = vcmp.gt.s32.totalorder %v40_v9, 5 }
  0x24   :  { %v562_v10 = vsel %vm41_vm1, %v40_v9, 5 }
  0x25 LB: > { %s573_s2 = sadd.s32 1, %s492_s1   ;;  %v108_v12 = vadd.s32 2, %v558_v5  ;;  %s492_s1 = sphi %s567_s1, %s653_s1  }
  0x26   : > { %s576_s14 = sand.u32 1, %s573_s2  ;;  %v104_v11 = vstv %s573_s2 }
  0x27   : > { %s301_s15 = sshll.u32 %s576_s14, 3  ;;  %s75_s17 = scalar_lea.sflag [#allocation4], %s576_s14 }
  0x28   : > { %s579_s16 = scalar_lea.vmem [#allocation3], %s301_s15 }
  0x29   : > { %486 = dma.done.wait %s75_s17, 128 }
  0x2a   : > { %487 = vsyncadd %s75_s17, 4294967168  ;;  %v500_v13 = vmov 0   ;;  %v105_v14 = vsub.s32 %v104_v11, %v562_v10  ;;  %v109_v15 = vadd.s32 %v104_v11, %v562_v10  ;;  %vm239_vm6 = vcmp.le.s32.totalorder %v104_v11, %v553_v4  ;;  %v151_v23 = vld [vmem:[#allocation7 + $0x78] sm:$0xff]  ;;  %v150_v25 = vld [vmem:[#allocation7 + $0x70] sm:$0xff]  ;;  %s86_s18 = ssub.s32 1, %s576_s14  ;;  %s79_s20 = sadd.s32 2, %s492_s1 }
  0x2b   : > { %383 = vset.pattern.permute.xlu0 %v500_v13  ;;  %384 = vset.pattern.permute.xlu1 %v500_v13  ;;  %v240_v22 = vsel %vm239_vm6, 1, %v500_v13  ;;  %v501_v24 = vmov 0.0   ;;  %v149_v26 = vld [vmem:[#allocation7 + $0x68] sm:$0xff]  ;;  %v148_v27 = vld [vmem:[#allocation7 + $0x60] sm:$0xff]  ;;  %v147_v28 = vld [vmem:[#allocation7 + $0x58] sm:$0xff]  ;;  %vm502_vm10 = vmmov 0   ;;  %p606_p11 = scmp.le.s32.totalorder %s79_s20, %s644_s0 }
  0x2c   : > { %vm106_vm2 = vcmp.gt.s32.totalorder %v105_v14, 1  ;;  %vm110_vm3 = vcmp.lt.s32.totalorder %v108_v12, %v109_v15  ;;  %327 = vmatprep.subr.mxu0 %v501_v24  ;;  %v146_v29 = vld [vmem:[#allocation7 + $0x50] sm:$0xff]  ;;  %v145_v30 = vld [vmem:[#allocation7 + $0x48] sm:$0xff]  ;;  %v144_v37 = vld [vmem:[#allocation7 + $0x40] sm:$0xff]  ;;  %359 = vmatprep.mubr.msk.f32.mxu0 %vm502_vm10, %v501_v24  ;;  %s304_s19 = sshll.u32 %s86_s18, 3  ;;  %s303_s21 = sshll.u32 %s492_s1, 7 }
  0x2d   : > { %v107_v16 = vsel %vm106_vm2, %v105_v14, 1  ;;  %v111_v17 = vsel %vm110_vm3, %v108_v12, %v109_v15  ;;  %328 = vmatpush3.msra.mxu0 %v151_v23  ;;  %v587_v32 = vld [vmem:[#allocation2] sm:$0xff]  ;;  %v143_v38 = vld [vmem:[#allocation7 + $0x38] sm:$0xff]  ;;  %v142_v39 = vld [vmem:[#allocation7 + $0x30] sm:$0xff]  ;;  %s289_s27 = scalar_lea.hbm %s648_s4, %s303_s21  ;;  %s91_s29 = scalar_lea.vmem [#allocation3], %s304_s19 }
  0x2e   : > { %v305_v18 = vadd.s32 4294967295, %v107_v16  ;;  %v306_v19 = vadd.s32 4294967295, %v111_v17  ;;  %329 = vmatprep.subr.mxu0 %v501_v24  ;;  %v128_v33 = vsub.f32 0.0, %v587_v32  ;;  %v141_v40 = vld [vmem:[#allocation7 + $0x28] sm:$0xff]  ;;  %v140_v41 = vld [vmem:[#allocation7 + $0x20] sm:$0xff]  ;;  %v139_v42 = vld [vmem:[#allocation7 + $0x18] sm:$0xff] }
  0x2f   : > { %330 = vmatpush3.msra.mxu0 %v150_v25  ;;  %v138_v43 = vld [vmem:[#allocation7 + $0x10] sm:$0xff]  ;;  %v137_v44 = vld [vmem:[#allocation7 + $0x8] sm:$0xff]  ;;  %v136_v45 = vld [vmem:[#allocation7] sm:$0xff]  ;;  %s290_s28 = scalar_lea.hbm %s289_s27, 256  ;;  %s100_s30 = sshll.u32 %s91_s29, 4  ;;  %s101_s30 = int_to_ptr.vmem [resolvable:$true] %s100_s30 }
  0x30   : > { %vm113_vm4 = vcmp.gt.s32.totalorder %v305_v18, 0  ;;  %vm116_vm5 = vcmp.lt.s32.totalorder %v108_v12, %v306_v19  ;;  %331 = vmatprep.subr.mxu0 %v501_v24  ;;  %s92_s6 = scalar_lea.sflag [#allocation4], %s86_s18  ;;  %s459_s8 = scalar_lea.hbm %s289_s27, 384 }
  0x31   : > { %v114_v20 = vsel %vm113_vm4, %v305_v18, 0  ;;  %v117_v21 = vsel %vm116_vm5, %v108_v12, %v306_v19  ;;  %332 = vmatpush3.msra.mxu0 %v149_v26  ;;  %p434_p12 = scmp.ne.s32.totalorder %s290_s28, %s459_s8  ;;  %s437_s11 = scalar_lea.hbm %s648_s4, 1792 }
  0x32   : > { %120 = vperm.xlu0 %383, %v114_v20   ;;  %333 = vmatprep.subr.mxu0 %v501_v24  ;;  %p438_p1 = scmp.lt.s32.totalorder %s290_s28, %s648_s4  ;;  %p439_p2 = scmp.lt.s32.totalorder %s437_s11, %s459_s8 }
  0x33   : > { %334 = vmatpush3.msra.mxu0 %v148_v27  ;;  %p435_p13 = pnand %p434_p12, %p606_p11 }
  0x34   : > { %335 = vmatprep.subr.mxu0 %v501_v24  ;;  %p440_p3 = por %p439_p2, %p438_p1 }
  0x35   : > { %336 = vmatpush3.msra.mxu0 %v147_v28  ;;  %p436_p0 = pneg %p435_p13 }
  0x36   : > { %124 = vperm.xlu0 %383, %v117_v21   ;;  %337 = vmatprep.subr.mxu0 %v501_v24 }
  0x37   : > { %338 = vmatpush3.msra.mxu0 %v146_v29  ;;  %p441_p4 = pnand %p440_p3, %p436_p0 }
  0x38   : > { %339 = vmatprep.subr.mxu0 %v501_v24 }
  0x39   : > { %340 = vmatpush3.msra.mxu0 %v145_v30 }
  0x3a   : > { %234 = vperm.xlu0 %383, %v111_v17   ;;  %341 = vmatprep.subr.mxu0 %v501_v24 }
  0x3b   : > { %342 = vmatpush3.msra.mxu0 %v144_v37 }
  0x3c   : > { %343 = vmatprep.subr.mxu0 %v501_v24 }
  0x3d   : > { %344 = vmatpush3.msra.mxu0 %v143_v38 }
  0x3e   : > { %242 = vperm.xlu0 %383, %v240_v22   ;;  %345 = vmatprep.subr.mxu0 %v501_v24 }
  0x3f   : > { %346 = vmatpush3.msra.mxu0 %v142_v39 }
  0x40   : > { %347 = vmatprep.subr.mxu0 %v501_v24 }
  0x41   : > { %348 = vmatpush3.msra.mxu0 %v141_v40 }
  0x42   : > { %349 = vmatprep.subr.mxu0 %v501_v24 }
  0x43   : > { %350 = vmatpush3.msra.mxu0 %v140_v41 }
  0x44   : > { %351 = vmatprep.subr.mxu0 %v501_v24 }
  0x45   : > { %352 = vmatpush3.msra.mxu0 %v139_v42 }
  0x46   : > { %353 = vmatprep.subr.mxu0 %v501_v24 }
  0x47   : > { %354 = vmatpush3.msra.mxu0 %v138_v43 }
  0x48   : > { %355 = vmatprep.subr.mxu0 %v501_v24 }
  0x49   : > { %356 = vmatpush3.msra.mxu0 %v137_v44 }
  0x4a   : > { %357 = vmatprep.subr.mxu0 %v501_v24 }
  0x4b   : > { %358 = vmatpush3.msra.mxu0 %v136_v45 }
  0xad   : > { %v121_v31 = vpop.permute.xlu0 %120 }
  0xae   : > { %vm122_vm7 = vcmp.ge.s32.totalorder %v541_v1, %v121_v31 }
  0xb1   : > { %v125_v34 = vpop.permute.xlu0 %124 }
  0xb2   : > { %vm126_vm8 = vcmp.lt.s32.totalorder %v541_v1, %v125_v34 }
  0xb3   : > { %vm592_vm9 = vmand %vm122_vm7, %vm126_vm8 }
  0xb4   : > { %v129_v36 = vsel %vm592_vm9, %v128_v33, -inf }
  0xb5   : > { %130 = vmax.xlane.f32.xlu1 %v129_v36 }
  0xc6   : > { %230 = vperm.xlu1 %384, %v107_v16  }
 0x13e   : > { %v131_v46 = vpop.xlane.xlu1 %130 }
 0x13f   : > { %v132_v47 = vsub.f32 %v128_v33, %v131_v46 }
 0x141   : > { %v133_v48 = vmul.f32 1.442695, %v132_v47 }
 0x143   : > { %385 = vpow2.f32 %v133_v48 }
 0x150   : > { %v386_v49 = vpop.eup %385 }
 0x151   : > { %360 = vmatmul.mubr.msk.f32.vlgmr.msra.gmra.mxu0 %vm592_vm9, %v386_v49 }
 0x152   : > { %444 = shalt.err (!%p441_p4)  }
 0x153   : > { %s445_s1 = scalar_lea.vmem %s101_s30, 128  ;;  %p452_p8 = scmp.lt.s32.totalorder %s101_s30, %s543_s7 }
 0x154   : > { %p446_p5 = scmp.ne.s32.totalorder %s101_s30, %s445_s1  ;;  %p453_p9 = scmp.lt.s32.totalorder %s424_s3, %s445_s1 }
 0x156   : > { %p447_p6 = pnand %p446_p5, %p606_p11  ;;  %p454_p10 = por %p453_p9, %p452_p8 }
 0x158   : > { %p448_p7 = pneg %p447_p6 }
 0x15a   : > { %p455_p12 = pnand %p454_p10, %p448_p7 }
 0x15c   : > { %458 = shalt.err (!%p455_p12)  }
 0x15d   : > { %363 = dma.hbm_to_vmem [thread:$0]  (%p606_p11), %s290_s28, 128, %s101_s30, %s92_s6  ;;  %v235_v54 = vpop.permute.xlu0 %234  ;;  %v231_v56 = vpop.permute.xlu1 %230 }
 0x15e   : > { %v227_v58 = vld [vmem:[%s579_s16] sm:$0xff]  ;;  %vm232_vm11 = vcmp.ge.s32.totalorder %v541_v1, %v231_v56  ;;  %vm236_vm12 = vcmp.lt.s32.totalorder %v541_v1, %v235_v54  ;;  %p67_p11 = scmp.ge.s32.totalorder %s573_s2, %s644_s0  ;;  %s653_s1 = smov %s573_s2 }
 0x15f   : > { %vm237_vm13 = vmand %vm232_vm11, %vm236_vm12 }
 0x161   : > { %v243_v60 = vpop.permute.xlu0 %242 }
 0x162   : > { %vm244_vm14 = vcmp.eq.s32.totalorder %v243_v60, 1 }
 0x211   : > { %v218_v50 = vpop.f32.mrf.mxu0 }
 0x212   : > { %v222_v51 = vmax.f32 %v218_v50, 1e-30 }
 0x213   : > { %v361_v52 = vpop.f32.mrf.mxu0 }
 0x214   : > { %387 = vlog2.f32 %v222_v51 }
 0x221   : > { %v388_v53 = vpop.eup %387 }
 0x222   : > { %v224_v55 = vmul.f32 0.6931472, %v388_v53 }
 0x224   : > { %v225_v57 = vadd.f32 %v224_v55, %v131_v46 }
 0x226   : > { %v226_v59 = vmul.f32 -1.0, %v225_v57 }
 0x228   : > { %v228_v61 = vadd.f32 %v227_v58, %v226_v59  ;;  %70 = sbr.rel (!%p67_p11) target bundleno = 37 (0x25), region = 64 }
 0x22a   : > { %v238_v62 = vsel %vm237_vm13, %v228_v61, inf }
 0x22b   : > { %v245_v63 = vsel %vm244_vm14, %v238_v62, %v587_v32 }
 0x22c   : > { %246 = vst [vmem:[#allocation2] sm:$0xff] %v245_v63 }
 0x22d PF:  { %v503_v0 = vmov 0   ;;  %s504_s16 = smov [#allocation10]  }
 0x22e   :  { %389 = vset.pattern.permute.xlu0 %v503_v0  ;;  %s262_s17 = sshll.u32 %s504_s16, 4  ;;  %s263_s17 = int_to_ptr.vmem [resolvable:$true] %s262_s17 }
 0x22f   :  { %249 = vperm.xlu0 %389, %v558_v5   ;;  %s460_s18 = scalar_lea.vmem %s263_s17, 128  ;;  %p465_p0 = scmp.lt.s32.totalorder %s263_s17, %s263_s17 }
 0x230   :  { %p461_p13 = scmp.ne.s32.totalorder %s263_s17, %s460_s18  ;;  %p466_p1 = scmp.lt.s32.totalorder %s460_s18, %s460_s18 }
 0x232   :  { %p467_p2 = por %p466_p1, %p465_p0 }
 0x233   :  { %v247_v2 = vld [vmem:[#allocation2] sm:$0xff] }
 0x234   :  { %p468_p3 = pnand %p467_p2, %p461_p13 }
 0x2aa   :  { %v250_v3 = vpop.permute.xlu0 %249 }
 0x2ab   :  { %vm251_vm15 = vcmp.eq.s32.totalorder %v541_v1, %v250_v3 }
 0x2ac   :  { %v252_v6 = vsel %vm251_vm15, %v247_v2, 0.0 }
 0x2ad   :  { %253 = vadd.xlane.f32.xlu0 %v252_v6 }
 0x336   :  { %v254_v7 = vpop.xlane.xlu0 %253 }
 0x337   :  { %255 = vst [vmem:[#allocation10] sm:$0xff] %v254_v7 }
 0x338   :  { %471 = shalt.err (!%p468_p3)
}
 0x339   :  { %265 = dma.vmem_to_hbm [thread:$0]  %s263_s17, 128, %s649_s5, [#allocation9]  }
 0x33a   :  { %488 = dma.done.wait [#allocation9], 128  }
 0x33b   :  { %489 = vsyncadd [#allocation9], 4294967168 }
 0x33c   :  { %269 = vsyncpa [#allocation8], 1 }
 0x33d   :  { %270 = vsyncpa [#allocation9], 1 }
 0x33e   :  { %271 = vsyncmov [#allocation4] }
 0x341   :  { %s272_s7 = vpop.sfrf %271 }
 0x342   :  { %p308_p4 = scmp.ne.s32.totalorder %s272_s7, 0 }
 0x344   :  { %276 = shalt.err (%p308_p4)  }
 0x345   :  { %278 = vsyncmov [#allocation4 + $0x1] }
 0x348   :  { %s279_s3 = vpop.sfrf %278 }
 0x349   :  { %p309_p5 = scmp.ne.s32.totalorder %s279_s3, 0 }
 0x34b   :  { %283 = shalt.err (%p309_p5)  }

</bundles_post_ra>
